<compile_context>
chip_gen: v5e
topology: v5e:2x2
jax: 0.10.0
libtpu: 0.0.40
codegen_flags: <defaults>
</compile_context>

<pallas_src>
import jax
import jax.numpy as jnp
from jax.experimental import pallas as pl
from jax.experimental.pallas import tpu as pltpu


def rnn_kernel(ids_ref, tproj_ref, wh_ref, wo_ref, bo_ref, out_ref):
    batch, seq = ids_ref.shape          # real batch / seq (static ints)
    v_p, h_p = tproj_ref.shape          # padded vocab / hidden (128-multiples)
    b_p = out_ref.shape[0]              # sublane-padded batch (multiple of 8)

    # ---- Fused embedding gather + input projection (hoisted out of the
    # recurrence).  Build per-timestep one-hot blocks from the SMEM token ids,
    # then a single MXU matmul against tproj = embed_table @ We + b_internal.
    b_iota = jax.lax.broadcasted_iota(jnp.int32, (b_p, v_p), 0)
    v_iota = jax.lax.broadcasted_iota(jnp.int32, (b_p, v_p), 1)
    blocks = []
    for t in range(seq):
        # Padded batch rows keep id = -1 -> all-zero one-hot row -> pre row 0.
        ids_t = jnp.full((b_p, v_p), -1, jnp.int32)
        for b in range(batch):
            ids_t = jnp.where(b_iota == b, ids_ref[b, t], ids_t)
        blocks.append((v_iota == ids_t).astype(jnp.float32))
    onehot = jnp.concatenate(blocks, axis=0)            # (seq*b_p, v_p)

    # pre rows [t*b_p:(t+1)*b_p] = emb_t @ We + b_internal (exact: one-hot).
    pre = jnp.dot(onehot, tproj_ref[...], preferred_element_type=jnp.float32)

    # ---- Serial recurrence, fully unrolled (seq is a small static constant).
    # Only h @ Wh + tanh sits on the critical path; pre_t slices are
    # independent of h and overlap with the matmul drain.
    # TODO(synk): hold Wh weight-stationary via pltpu.matmul_push_rhs /
    # matmul_acc_lhs / matmul_pop if a bundle dump shows the RHS re-pushed
    # every unrolled step.
    wh = wh_ref[...]                                    # vreg-resident (h_p, h_p)
    h = jnp.zeros((b_p, h_p), jnp.float32)
    for t in range(seq):
        pre_t = pre[t * b_p:(t + 1) * b_p, :]           # static, vreg-aligned
        h = jnp.tanh(jnp.dot(h, wh, preferred_element_type=jnp.float32) + pre_t)

    # ---- Output head.  Padded batch rows / padded output lanes are garbage
    # (bias only) and are sliced off by the wrapper — never consume them.
    out_ref[...] = (jnp.dot(h, wo_ref[...], preferred_element_type=jnp.float32)
                    + bo_ref[...])


def _round_up(n, m):
    return ((n + m - 1) // m) * m


def prepare_rnn_params(embed_table, W_internal, b_internal, W_out, b_out,
                       hidden_dim):
    """One-time weight preprocessing (cache the result; do NOT call per step).

    PyTorch Linear weight is (out, in); torch.cat((hidden, emb), axis=1) puts
    hidden first, so W_internal[:, :H] is the recurrent part and
    W_internal[:, H:] the input part.
    """
    vocab, _ = embed_table.shape
    out_dim = W_out.shape[0]

    LANE = 128
    h_p = _round_up(hidden_dim, LANE)
    v_p = _round_up(vocab, LANE)
    o_p = _round_up(out_dim, LANE)

    Wh = W_internal[:, :hidden_dim].T.astype(jnp.float32)        # (H, H)
    We = W_internal[:, hidden_dim:].T.astype(jnp.float32)        # (E, H)

    # Fold embedding lookup + input projection + recurrent bias into a single
    # table: tproj[v] = embed_table[v] @ We + b_internal.
    tproj = embed_table.astype(jnp.float32) @ We + b_internal.astype(jnp.float32)
    tproj = jnp.pad(tproj, ((0, v_p - vocab), (0, h_p - hidden_dim)))

    Wh = jnp.pad(Wh, ((0, h_p - hidden_dim), (0, h_p - hidden_dim)))
    Wo = jnp.pad(W_out.T.astype(jnp.float32),
                 ((0, h_p - hidden_dim), (0, o_p - out_dim)))
    bo = jnp.pad(b_out.astype(jnp.float32), (0, o_p - out_dim)).reshape(1, o_p)

    return {"tproj": tproj, "wh": Wh, "wo": Wo, "bo": bo, "out_dim": out_dim}


def rnn_forward(x, params):
    """x: (batch, seq) int32 token ids; params from prepare_rnn_params."""
    batch, seq = x.shape
    b_p = _round_up(batch, 8)
    o_p = params["wo"].shape[1]
    out_dim = params["out_dim"]

    smem = pl.BlockSpec(memory_space=pltpu.MemorySpace.SMEM)
    vmem = pl.BlockSpec(memory_space=pltpu.MemorySpace.VMEM)

    out_p = pl.pallas_call(
        rnn_kernel,
        out_shape=jax.ShapeDtypeStruct((b_p, o_p), jnp.float32),
        in_specs=[smem, vmem, vmem, vmem, vmem],
        out_specs=vmem,
    )(x.astype(jnp.int32), params["tproj"], params["wh"], params["wo"],
      params["bo"])

    return out_p[:batch, :out_dim]


def rnn_reference(x, embed_table, W_internal, b_internal, W_out, b_out,
                  hidden_dim):
    """Pure-JAX reference matching the PyTorch forward."""
    batch, seq = x.shape
    emb_all = jnp.transpose(embed_table[x], (1, 0, 2)).astype(jnp.float32)
    h = jnp.zeros((batch, hidden_dim), jnp.float32)

    def step(h, emb_t):
        pre = jnp.concatenate([h, emb_t], axis=1)
        h = jnp.tanh(pre @ W_internal.T + b_internal)
        return h, None

    h, _ = jax.lax.scan(step, h, emb_all)
    return h @ W_out.T + b_out


if __name__ == "__main__":
    # Small shapes consistent with the module's forward.
    batch, seq = 2, 8
    vocab_size, embedding_dim, hidden_dim, output_dim = 50, 16, 32, 1

    key = jax.random.PRNGKey(0)
    k0, k1, k2, k3, k4, k5 = jax.random.split(key, 6)

    x = jax.random.randint(k0, (batch, seq), 0, vocab_size, dtype=jnp.int32)
    embed_table = jax.random.normal(k1, (vocab_size, embedding_dim),
                                    jnp.float32)
    W_internal = 0.1 * jax.random.normal(
        k2, (hidden_dim, embedding_dim + hidden_dim), jnp.float32)
    b_internal = 0.1 * jax.random.normal(k3, (hidden_dim,), jnp.float32)
    W_out = 0.1 * jax.random.normal(k4, (output_dim, hidden_dim), jnp.float32)
    b_out = 0.1 * jax.random.normal(k5, (output_dim,), jnp.float32)

    # Weight prep happens once; only the pallas_call runs per forward.
    params = prepare_rnn_params(embed_table, W_internal, b_internal, W_out,
                                b_out, hidden_dim)

    out = rnn_forward(x, params)
    out = jax.block_until_ready(out)

    ref = rnn_reference(x, embed_table, W_internal, b_internal, W_out, b_out,
                        hidden_dim)
    assert out.shape == (batch, output_dim)
    assert jnp.allclose(out, ref, atol=1e-5, rtol=1e-5), (out, ref)

    print("KERNEL_OK")
</pallas_src>

<mosaic_0001>
module attributes {stable_mosaic.version = 11 : i64} {
  func.func @rnn_kernel(%arg0: memref<2x8xi32, #tpu.memory_space<smem>>, %arg1: memref<128x128xf32, #tpu.memory_space<vmem>>, %arg2: memref<128x128xf32, #tpu.memory_space<vmem>>, %arg3: memref<128x128xf32, #tpu.memory_space<vmem>>, %arg4: memref<1x128xf32, #tpu.memory_space<vmem>>, %arg5: memref<8x128xf32, #tpu.memory_space<vmem>>) attributes {dimension_semantics = [], scalar_prefetch = 0 : i64, scratch_operands = 0 : i64, tpu.core_type = #tpu.core_type<tc>} {
    %0 = tpu.iota {dimensions = array<i32: 0>} : vector<8x128xi32>
    %1 = tpu.iota {dimensions = array<i32: 1>} : vector<8x128xi32>
    %c-1_i32 = arith.constant -1 : i32
    %2 = vector.broadcast %c-1_i32 : i32 to vector<8x128xi32>
    %c0_i32 = arith.constant 0 : i32
    %3 = vector.broadcast %c0_i32 : i32 to vector<8x128xi32>
    %4 = arith.cmpi eq, %0, %3 : vector<8x128xi32>
    %c0 = arith.constant 0 : index
    %c0_0 = arith.constant 0 : index
    %5 = memref.load %arg0[%c0, %c0_0] : memref<2x8xi32, #tpu.memory_space<smem>>
    %6 = vector.broadcast %5 : i32 to vector<8x128xi32>
    %7 = arith.select %4, %6, %2 : vector<8x128xi1>, vector<8x128xi32>
    %c1_i32 = arith.constant 1 : i32
    %8 = vector.broadcast %c1_i32 : i32 to vector<8x128xi32>
    %9 = arith.cmpi eq, %0, %8 : vector<8x128xi32>
    %c1 = arith.constant 1 : index
    %c0_1 = arith.constant 0 : index
    %10 = memref.load %arg0[%c1, %c0_1] : memref<2x8xi32, #tpu.memory_space<smem>>
    %11 = vector.broadcast %10 : i32 to vector<8x128xi32>
    %12 = arith.select %9, %11, %7 : vector<8x128xi1>, vector<8x128xi32>
    %13 = arith.cmpi eq, %1, %12 : vector<8x128xi32>
    %14 = arith.extui %13 : vector<8x128xi1> to vector<8x128xi32>
    %15 = arith.sitofp %14 : vector<8x128xi32> to vector<8x128xf32>
    %c-1_i32_2 = arith.constant -1 : i32
    %16 = vector.broadcast %c-1_i32_2 : i32 to vector<8x128xi32>
    %c0_i32_3 = arith.constant 0 : i32
    %17 = vector.broadcast %c0_i32_3 : i32 to vector<8x128xi32>
    %18 = arith.cmpi eq, %0, %17 : vector<8x128xi32>
    %c0_4 = arith.constant 0 : index
    %c1_5 = arith.constant 1 : index
    %19 = memref.load %arg0[%c0_4, %c1_5] : memref<2x8xi32, #tpu.memory_space<smem>>
    %20 = vector.broadcast %19 : i32 to vector<8x128xi32>
    %21 = arith.select %18, %20, %16 : vector<8x128xi1>, vector<8x128xi32>
    %c1_i32_6 = arith.constant 1 : i32
    %22 = vector.broadcast %c1_i32_6 : i32 to vector<8x128xi32>
    %23 = arith.cmpi eq, %0, %22 : vector<8x128xi32>
    %c1_7 = arith.constant 1 : index
    %c1_8 = arith.constant 1 : index
    %24 = memref.load %arg0[%c1_7, %c1_8] : memref<2x8xi32, #tpu.memory_space<smem>>
    %25 = vector.broadcast %24 : i32 to vector<8x128xi32>
    %26 = arith.select %23, %25, %21 : vector<8x128xi1>, vector<8x128xi32>
    %27 = arith.cmpi eq, %1, %26 : vector<8x128xi32>
    %28 = arith.extui %27 : vector<8x128xi1> to vector<8x128xi32>
    %29 = arith.sitofp %28 : vector<8x128xi32> to vector<8x128xf32>
    %c-1_i32_9 = arith.constant -1 : i32
    %30 = vector.broadcast %c-1_i32_9 : i32 to vector<8x128xi32>
    %c0_i32_10 = arith.constant 0 : i32
    %31 = vector.broadcast %c0_i32_10 : i32 to vector<8x128xi32>
    %32 = arith.cmpi eq, %0, %31 : vector<8x128xi32>
    %c0_11 = arith.constant 0 : index
    %c2 = arith.constant 2 : index
    %33 = memref.load %arg0[%c0_11, %c2] : memref<2x8xi32, #tpu.memory_space<smem>>
    %34 = vector.broadcast %33 : i32 to vector<8x128xi32>
    %35 = arith.select %32, %34, %30 : vector<8x128xi1>, vector<8x128xi32>
    %c1_i32_12 = arith.constant 1 : i32
    %36 = vector.broadcast %c1_i32_12 : i32 to vector<8x128xi32>
    %37 = arith.cmpi eq, %0, %36 : vector<8x128xi32>
    %c1_13 = arith.constant 1 : index
    %c2_14 = arith.constant 2 : index
    %38 = memref.load %arg0[%c1_13, %c2_14] : memref<2x8xi32, #tpu.memory_space<smem>>
    %39 = vector.broadcast %38 : i32 to vector<8x128xi32>
    %40 = arith.select %37, %39, %35 : vector<8x128xi1>, vector<8x128xi32>
    %41 = arith.cmpi eq, %1, %40 : vector<8x128xi32>
    %42 = arith.extui %41 : vector<8x128xi1> to vector<8x128xi32>
    %43 = arith.sitofp %42 : vector<8x128xi32> to vector<8x128xf32>
    %c-1_i32_15 = arith.constant -1 : i32
    %44 = vector.broadcast %c-1_i32_15 : i32 to vector<8x128xi32>
    %c0_i32_16 = arith.constant 0 : i32
    %45 = vector.broadcast %c0_i32_16 : i32 to vector<8x128xi32>
    %46 = arith.cmpi eq, %0, %45 : vector<8x128xi32>
    %c0_17 = arith.constant 0 : index
    %c3 = arith.constant 3 : index
    %47 = memref.load %arg0[%c0_17, %c3] : memref<2x8xi32, #tpu.memory_space<smem>>
    %48 = vector.broadcast %47 : i32 to vector<8x128xi32>
    %49 = arith.select %46, %48, %44 : vector<8x128xi1>, vector<8x128xi32>
    %c1_i32_18 = arith.constant 1 : i32
    %50 = vector.broadcast %c1_i32_18 : i32 to vector<8x128xi32>
    %51 = arith.cmpi eq, %0, %50 : vector<8x128xi32>
    %c1_19 = arith.constant 1 : index
    %c3_20 = arith.constant 3 : index
    %52 = memref.load %arg0[%c1_19, %c3_20] : memref<2x8xi32, #tpu.memory_space<smem>>
    %53 = vector.broadcast %52 : i32 to vector<8x128xi32>
    %54 = arith.select %51, %53, %49 : vector<8x128xi1>, vector<8x128xi32>
    %55 = arith.cmpi eq, %1, %54 : vector<8x128xi32>
    %56 = arith.extui %55 : vector<8x128xi1> to vector<8x128xi32>
    %57 = arith.sitofp %56 : vector<8x128xi32> to vector<8x128xf32>
    %c-1_i32_21 = arith.constant -1 : i32
    %58 = vector.broadcast %c-1_i32_21 : i32 to vector<8x128xi32>
    %c0_i32_22 = arith.constant 0 : i32
    %59 = vector.broadcast %c0_i32_22 : i32 to vector<8x128xi32>
    %60 = arith.cmpi eq, %0, %59 : vector<8x128xi32>
    %c0_23 = arith.constant 0 : index
    %c4 = arith.constant 4 : index
    %61 = memref.load %arg0[%c0_23, %c4] : memref<2x8xi32, #tpu.memory_space<smem>>
    %62 = vector.broadcast %61 : i32 to vector<8x128xi32>
    %63 = arith.select %60, %62, %58 : vector<8x128xi1>, vector<8x128xi32>
    %c1_i32_24 = arith.constant 1 : i32
    %64 = vector.broadcast %c1_i32_24 : i32 to vector<8x128xi32>
    %65 = arith.cmpi eq, %0, %64 : vector<8x128xi32>
    %c1_25 = arith.constant 1 : index
    %c4_26 = arith.constant 4 : index
    %66 = memref.load %arg0[%c1_25, %c4_26] : memref<2x8xi32, #tpu.memory_space<smem>>
    %67 = vector.broadcast %66 : i32 to vector<8x128xi32>
    %68 = arith.select %65, %67, %63 : vector<8x128xi1>, vector<8x128xi32>
    %69 = arith.cmpi eq, %1, %68 : vector<8x128xi32>
    %70 = arith.extui %69 : vector<8x128xi1> to vector<8x128xi32>
    %71 = arith.sitofp %70 : vector<8x128xi32> to vector<8x128xf32>
    %c-1_i32_27 = arith.constant -1 : i32
    %72 = vector.broadcast %c-1_i32_27 : i32 to vector<8x128xi32>
    %c0_i32_28 = arith.constant 0 : i32
    %73 = vector.broadcast %c0_i32_28 : i32 to vector<8x128xi32>
    %74 = arith.cmpi eq, %0, %73 : vector<8x128xi32>
    %c0_29 = arith.constant 0 : index
    %c5 = arith.constant 5 : index
    %75 = memref.load %arg0[%c0_29, %c5] : memref<2x8xi32, #tpu.memory_space<smem>>
    %76 = vector.broadcast %75 : i32 to vector<8x128xi32>
    %77 = arith.select %74, %76, %72 : vector<8x128xi1>, vector<8x128xi32>
    %c1_i32_30 = arith.constant 1 : i32
    %78 = vector.broadcast %c1_i32_30 : i32 to vector<8x128xi32>
    %79 = arith.cmpi eq, %0, %78 : vector<8x128xi32>
    %c1_31 = arith.constant 1 : index
    %c5_32 = arith.constant 5 : index
    %80 = memref.load %arg0[%c1_31, %c5_32] : memref<2x8xi32, #tpu.memory_space<smem>>
    %81 = vector.broadcast %80 : i32 to vector<8x128xi32>
    %82 = arith.select %79, %81, %77 : vector<8x128xi1>, vector<8x128xi32>
    %83 = arith.cmpi eq, %1, %82 : vector<8x128xi32>
    %84 = arith.extui %83 : vector<8x128xi1> to vector<8x128xi32>
    %85 = arith.sitofp %84 : vector<8x128xi32> to vector<8x128xf32>
    %c-1_i32_33 = arith.constant -1 : i32
    %86 = vector.broadcast %c-1_i32_33 : i32 to vector<8x128xi32>
    %c0_i32_34 = arith.constant 0 : i32
    %87 = vector.broadcast %c0_i32_34 : i32 to vector<8x128xi32>
    %88 = arith.cmpi eq, %0, %87 : vector<8x128xi32>
    %c0_35 = arith.constant 0 : index
    %c6 = arith.constant 6 : index
    %89 = memref.load %arg0[%c0_35, %c6] : memref<2x8xi32, #tpu.memory_space<smem>>
    %90 = vector.broadcast %89 : i32 to vector<8x128xi32>
    %91 = arith.select %88, %90, %86 : vector<8x128xi1>, vector<8x128xi32>
    %c1_i32_36 = arith.constant 1 : i32
    %92 = vector.broadcast %c1_i32_36 : i32 to vector<8x128xi32>
    %93 = arith.cmpi eq, %0, %92 : vector<8x128xi32>
    %c1_37 = arith.constant 1 : index
    %c6_38 = arith.constant 6 : index
    %94 = memref.load %arg0[%c1_37, %c6_38] : memref<2x8xi32, #tpu.memory_space<smem>>
    %95 = vector.broadcast %94 : i32 to vector<8x128xi32>
    %96 = arith.select %93, %95, %91 : vector<8x128xi1>, vector<8x128xi32>
    %97 = arith.cmpi eq, %1, %96 : vector<8x128xi32>
    %98 = arith.extui %97 : vector<8x128xi1> to vector<8x128xi32>
    %99 = arith.sitofp %98 : vector<8x128xi32> to vector<8x128xf32>
    %c-1_i32_39 = arith.constant -1 : i32
    %100 = vector.broadcast %c-1_i32_39 : i32 to vector<8x128xi32>
    %c0_i32_40 = arith.constant 0 : i32
    %101 = vector.broadcast %c0_i32_40 : i32 to vector<8x128xi32>
    %102 = arith.cmpi eq, %0, %101 : vector<8x128xi32>
    %c0_41 = arith.constant 0 : index
    %c7 = arith.constant 7 : index
    %103 = memref.load %arg0[%c0_41, %c7] : memref<2x8xi32, #tpu.memory_space<smem>>
    %104 = vector.broadcast %103 : i32 to vector<8x128xi32>
    %105 = arith.select %102, %104, %100 : vector<8x128xi1>, vector<8x128xi32>
    %c1_i32_42 = arith.constant 1 : i32
    %106 = vector.broadcast %c1_i32_42 : i32 to vector<8x128xi32>
    %107 = arith.cmpi eq, %0, %106 : vector<8x128xi32>
    %c1_43 = arith.constant 1 : index
    %c7_44 = arith.constant 7 : index
    %108 = memref.load %arg0[%c1_43, %c7_44] : memref<2x8xi32, #tpu.memory_space<smem>>
    %109 = vector.broadcast %108 : i32 to vector<8x128xi32>
    %110 = arith.select %107, %109, %105 : vector<8x128xi1>, vector<8x128xi32>
    %111 = arith.cmpi eq, %1, %110 : vector<8x128xi32>
    %112 = arith.extui %111 : vector<8x128xi1> to vector<8x128xi32>
    %113 = arith.sitofp %112 : vector<8x128xi32> to vector<8x128xf32>
    %114 = tpu.concatenate %15, %29, %43, %57, %71, %85, %99, %113 in 0 : vector<8x128xf32>, vector<8x128xf32>, vector<8x128xf32>, vector<8x128xf32>, vector<8x128xf32>, vector<8x128xf32>, vector<8x128xf32>, vector<8x128xf32> -> vector<64x128xf32>
    %c0_45 = arith.constant 0 : index
    %c0_46 = arith.constant 0 : index
    %115 = vector.load %arg1[%c0_45, %c0_46] : memref<128x128xf32, #tpu.memory_space<vmem>>, vector<128x128xf32>
    %cst = arith.constant dense<0.000000e+00> : vector<64x128xf32>
    %116 = tpu.matmul %114, %115, %cst {dimension_numbers = #tpu.dot_dimension_numbers<[1], [0], [0], [1], [0, 0, 1, 1], [], []>} : vector<64x128xf32>, vector<128x128xf32>, vector<64x128xf32> -> vector<64x128xf32>
    %c0_47 = arith.constant 0 : index
    %c0_48 = arith.constant 0 : index
    %117 = vector.load %arg2[%c0_47, %c0_48] : memref<128x128xf32, #tpu.memory_space<vmem>>, vector<128x128xf32>
    %cst_49 = arith.constant 0.000000e+00 : f32
    %118 = vector.broadcast %cst_49 : f32 to vector<8x128xf32>
    %119 = vector.extract_strided_slice %116 {offsets = [0, 0], sizes = [8, 128], strides = [1, 1]} : vector<64x128xf32> to vector<8x128xf32>
    %cst_50 = arith.constant dense<0.000000e+00> : vector<8x128xf32>
    %120 = tpu.matmul %118, %117, %cst_50 {dimension_numbers = #tpu.dot_dimension_numbers<[1], [0], [0], [1], [0, 0, 1, 1], [], []>} : vector<8x128xf32>, vector<128x128xf32>, vector<8x128xf32> -> vector<8x128xf32>
    %121 = arith.addf %120, %119 : vector<8x128xf32>
    %122 = math.tanh %121 : vector<8x128xf32>
    %123 = vector.extract_strided_slice %116 {offsets = [8, 0], sizes = [8, 128], strides = [1, 1]} : vector<64x128xf32> to vector<8x128xf32>
    %cst_51 = arith.constant dense<0.000000e+00> : vector<8x128xf32>
    %124 = tpu.matmul %122, %117, %cst_51 {dimension_numbers = #tpu.dot_dimension_numbers<[1], [0], [0], [1], [0, 0, 1, 1], [], []>} : vector<8x128xf32>, vector<128x128xf32>, vector<8x128xf32> -> vector<8x128xf32>
    %125 = arith.addf %124, %123 : vector<8x128xf32>
    %126 = math.tanh %125 : vector<8x128xf32>
    %127 = vector.extract_strided_slice %116 {offsets = [16, 0], sizes = [8, 128], strides = [1, 1]} : vector<64x128xf32> to vector<8x128xf32>
    %cst_52 = arith.constant dense<0.000000e+00> : vector<8x128xf32>
    %128 = tpu.matmul %126, %117, %cst_52 {dimension_numbers = #tpu.dot_dimension_numbers<[1], [0], [0], [1], [0, 0, 1, 1], [], []>} : vector<8x128xf32>, vector<128x128xf32>, vector<8x128xf32> -> vector<8x128xf32>
    %129 = arith.addf %128, %127 : vector<8x128xf32>
    %130 = math.tanh %129 : vector<8x128xf32>
    %131 = vector.extract_strided_slice %116 {offsets = [24, 0], sizes = [8, 128], strides = [1, 1]} : vector<64x128xf32> to vector<8x128xf32>
    %cst_53 = arith.constant dense<0.000000e+00> : vector<8x128xf32>
    %132 = tpu.matmul %130, %117, %cst_53 {dimension_numbers = #tpu.dot_dimension_numbers<[1], [0], [0], [1], [0, 0, 1, 1], [], []>} : vector<8x128xf32>, vector<128x128xf32>, vector<8x128xf32> -> vector<8x128xf32>
    %133 = arith.addf %132, %131 : vector<8x128xf32>
    %134 = math.tanh %133 : vector<8x128xf32>
    %135 = vector.extract_strided_slice %116 {offsets = [32, 0], sizes = [8, 128], strides = [1, 1]} : vector<64x128xf32> to vector<8x128xf32>
    %cst_54 = arith.constant dense<0.000000e+00> : vector<8x128xf32>
    %136 = tpu.matmul %134, %117, %cst_54 {dimension_numbers = #tpu.dot_dimension_numbers<[1], [0], [0], [1], [0, 0, 1, 1], [], []>} : vector<8x128xf32>, vector<128x128xf32>, vector<8x128xf32> -> vector<8x128xf32>
    %137 = arith.addf %136, %135 : vector<8x128xf32>
    %138 = math.tanh %137 : vector<8x128xf32>
    %139 = vector.extract_strided_slice %116 {offsets = [40, 0], sizes = [8, 128], strides = [1, 1]} : vector<64x128xf32> to vector<8x128xf32>
    %cst_55 = arith.constant dense<0.000000e+00> : vector<8x128xf32>
    %140 = tpu.matmul %138, %117, %cst_55 {dimension_numbers = #tpu.dot_dimension_numbers<[1], [0], [0], [1], [0, 0, 1, 1], [], []>} : vector<8x128xf32>, vector<128x128xf32>, vector<8x128xf32> -> vector<8x128xf32>
    %141 = arith.addf %140, %139 : vector<8x128xf32>
    %142 = math.tanh %141 : vector<8x128xf32>
    %143 = vector.extract_strided_slice %116 {offsets = [48, 0], sizes = [8, 128], strides = [1, 1]} : vector<64x128xf32> to vector<8x128xf32>
    %cst_56 = arith.constant dense<0.000000e+00> : vector<8x128xf32>
    %144 = tpu.matmul %142, %117, %cst_56 {dimension_numbers = #tpu.dot_dimension_numbers<[1], [0], [0], [1], [0, 0, 1, 1], [], []>} : vector<8x128xf32>, vector<128x128xf32>, vector<8x128xf32> -> vector<8x128xf32>
    %145 = arith.addf %144, %143 : vector<8x128xf32>
    %146 = math.tanh %145 : vector<8x128xf32>
    %147 = vector.extract_strided_slice %116 {offsets = [56, 0], sizes = [8, 128], strides = [1, 1]} : vector<64x128xf32> to vector<8x128xf32>
    %cst_57 = arith.constant dense<0.000000e+00> : vector<8x128xf32>
    %148 = tpu.matmul %146, %117, %cst_57 {dimension_numbers = #tpu.dot_dimension_numbers<[1], [0], [0], [1], [0, 0, 1, 1], [], []>} : vector<8x128xf32>, vector<128x128xf32>, vector<8x128xf32> -> vector<8x128xf32>
    %149 = arith.addf %148, %147 : vector<8x128xf32>
    %150 = math.tanh %149 : vector<8x128xf32>
    %c0_58 = arith.constant 0 : index
    %c0_59 = arith.constant 0 : index
    %151 = vector.load %arg3[%c0_58, %c0_59] : memref<128x128xf32, #tpu.memory_space<vmem>>, vector<128x128xf32>
    %cst_60 = arith.constant dense<0.000000e+00> : vector<8x128xf32>
    %152 = tpu.matmul %150, %151, %cst_60 {dimension_numbers = #tpu.dot_dimension_numbers<[1], [0], [0], [1], [0, 0, 1, 1], [], []>} : vector<8x128xf32>, vector<128x128xf32>, vector<8x128xf32> -> vector<8x128xf32>
    %c0_61 = arith.constant 0 : index
    %c0_62 = arith.constant 0 : index
    %153 = vector.load %arg4[%c0_61, %c0_62] : memref<1x128xf32, #tpu.memory_space<vmem>>, vector<1x128xf32>
    %154 = vector.broadcast %153 : vector<1x128xf32> to vector<8x128xf32>
    %155 = arith.addf %152, %154 : vector<8x128xf32>
    %c0_63 = arith.constant 0 : index
    %c0_64 = arith.constant 0 : index
    %156 = vector.load %arg5[%c0_63, %c0_64] : memref<8x128xf32, #tpu.memory_space<vmem>>, vector<8x128xf32>
    tpu.vector_store %arg5[%c0_63, %c0_64], %155 {strides = array<i32>} : memref<8x128xf32, #tpu.memory_space<vmem>>, vector<8x128xf32>,
    return
  }
}

</mosaic_0001>

<bundles_post_ra>
// kernel: tpu_custom_call.1
= control target key start
LH: loop header
LB: loop body
LE: loop exit
PB: predicated region body
PF: predicated region fallthrough
CT: control target
= control target key end

     0   :  { %10 = vsyncpa [#allocation5], 0  ;;  %s910_s0 = inlined_call_operand.hbm [shape: s32[2,8], index: 0, kind: input, shape index: {}]   ;;  %s911_s1 = inlined_call_operand.hbm [shape: f32[128,128], index: 1, kind: input, shape index: {}]   ;;  %s912_s2 = inlined_call_operand.hbm [shape: f32[128,128], index: 2, kind: input, shape index: {}]   ;;  %s913_s3 = inlined_call_operand.hbm [shape: f32[128,128], index: 3, kind: input, shape index: {}]   ;;  %s914_s4 = inlined_call_operand.vmem [shape: f32[1,128], index: 4, kind: input, shape index: {}]   ;;  %s915_s5 = inlined_call_operand.hbm [shape: f32[8,128], index: 5, kind: output, shape index: {}]  }
   0x1   :  { %11 = vsyncpa [#allocation3], 0 }
   0x2   :  { %12 = vsyncpa [#allocation8], 0 }
   0x3   :  { %13 = vsyncpa [#allocation4], 0  ;;  %s40_s20 = sshll.u32 %s912_s2, 4  ;;  %s633_s21 = smov [#allocation7]   ;;  %s41_s20 = int_to_ptr.hbm [resolvable:$true] %s40_s20 }
   0x4   :  { %s42_s22 = sshll.u32 %s633_s21, 4  ;;  %s19_s25 = sshll.u32 %s910_s0, 4  ;;  %s43_s22 = int_to_ptr.vmem [resolvable:$true] %s42_s22  ;;  %s20_s25 = int_to_ptr.hbm [resolvable:$true] %s19_s25 }
   0x5   :  { %s634_s26 = smov 128   ;;  %s635_s27 = smov 8  }
   0x6   :  { %48 = dma.hbm_to_vmem [thread:$0]  %s41_s20, 2048, %s43_s22, [#allocation8], %s634_s26, %s634_s26, %s635_s27  }
   0x7   :  { %s636_s28 = smov [#allocation2]   ;;  %s27_s6 = sshll.u32 %s911_s1, 4  ;;  %s28_s6 = int_to_ptr.hbm [resolvable:$true] %s27_s6 }
   0x8   :  { %22 = dma.hbm_to_smem %s20_s25, 32, %s636_s28, [#allocation5]  }
   0x9   :  { %s637_s2 = smov [#allocation6]   ;;  %s53_s10 = sshll.u32 %s913_s3, 4  ;;  %s54_s10 = int_to_ptr.hbm [resolvable:$true] %s53_s10 }
   0xa   :  { %s29_s7 = sshll.u32 %s637_s2, 4  ;;  %s638_s0 = smov [#allocation9]   ;;  %s30_s7 = int_to_ptr.vmem [resolvable:$true] %s29_s7 }
   0xb   :  { %35 = dma.hbm_to_vmem [thread:$0]  %s28_s6, 2048, %s30_s7, [#allocation3], %s634_s26, %s634_s26, %s635_s27  }
   0xc   :  { %s55_s11 = sshll.u32 %s638_s0, 4  ;;  %s56_s11 = int_to_ptr.vmem [resolvable:$true] %s55_s11 }
   0xd   :  { %61 = dma.hbm_to_vmem [thread:$0]  %s54_s10, 2048, %s56_s11, [#allocation8], %s634_s26, %s634_s26, %s635_s27  }
   0xe   :  { %625 = dma.done.wait [#allocation5], 32  }
   0xf   :  { %626 = vsyncadd [#allocation5], 4294967264 }
  0x10   :  { %627 = dma.done.wait [#allocation3], 2048  }
  0x11   :  { %628 = vsyncadd [#allocation3], 4294965248 }
  0x12   :  { %629 = dma.done.wait [#allocation8], 4096  }
  0x13   :  { %630 = vsyncadd [#allocation8], 4294963200 }
  0x14   :  { %80 = sfence }
  0x15   :  { %v174_v0 = vld [vmem:[#allocation6 + $0x78] sm:$0xff]  ;;  %v173_v2 = vld [vmem:[#allocation6 + $0x70] sm:$0xff]  ;;  %v172_v4 = vld [vmem:[#allocation6 + $0x68] sm:$0xff]  ;;  %v81_v16 = vlaneseq  ;;  %s716_s1 = sld [smem:[#allocation2]]  ;;  %v639_v39 = vmov 1.0   ;;  %v640_v40 = vmov 0.0  }
  0x16   :  { %v684_v1 = vld [vmem:[#allocation7 + $0x78] sm:$0xff]  ;;  %175 = vmatpush.msra.mxu0 %v174_v0  ;;  %v687_v3 = vld [vmem:[#allocation7 + $0x70] sm:$0xff]  ;;  %v689_v5 = vld [vmem:[#allocation7 + $0x68] sm:$0xff]  ;;  %s726_s3 = sld [smem:[#allocation2 + $0x80]]  ;;  %s641_s28 = smov [#allocation10]  }
  0x17   :  { %232 = vmatpush.msra.mxu1 %v684_v1  ;;  %253 = vmatpush.msra.mxu2 %v684_v1  ;;  %v171_v6 = vld [vmem:[#allocation6 + $0x60] sm:$0xff]  ;;  %v170_v8 = vld [vmem:[#allocation6 + $0x58] sm:$0xff]  ;;  %v169_v10 = vld [vmem:[#allocation6 + $0x50] sm:$0xff]  ;;  %v730_v21 = vshrl.u32 %v81_v16, 7  ;;  %v761_v33 = vand.u32 127, %v81_v16  ;;  %s462_s12 = sld [smem:[#allocation2 + $0x1]] }
  0x18   :  { %274 = vmatpush.msra.mxu3 %v684_v1  ;;  %176 = vmatpush.msra.mxu0 %v173_v2  ;;  %v694_v7 = vld [vmem:[#allocation7 + $0x60] sm:$0xff]  ;;  %v699_v9 = vld [vmem:[#allocation7 + $0x58] sm:$0xff]  ;;  %v704_v11 = vld [vmem:[#allocation7 + $0x50] sm:$0xff]  ;;  %s463_s13 = sld [smem:[#allocation2 + $0x81]]  ;;  %s446_s29 = sshll.u32 %s641_s28, 4  ;;  %s447_s29 = int_to_ptr.vmem [resolvable:$true] %s446_s29 }
  0x19   :  { %233 = vmatpush.msra.mxu1 %v687_v3  ;;  %254 = vmatpush.msra.mxu2 %v687_v3  ;;  %v168_v12 = vld [vmem:[#allocation6 + $0x48] sm:$0xff]  ;;  %v167_v14 = vld [vmem:[#allocation6 + $0x40] sm:$0xff]  ;;  %v166_v17 = vld [vmem:[#allocation6 + $0x38] sm:$0xff]  ;;  %vm85_vm0 = vcmp.eq.s32.totalorder %v730_v21, 0  ;;  %vm89_vm1 = vcmp.eq.s32.totalorder %v730_v21, 1  ;;  %s465_s14 = sld [smem:[#allocation2 + $0x2]] }
  0x1a   :  { %275 = vmatpush.msra.mxu3 %v687_v3  ;;  %177 = vmatpush.msra.mxu0 %v172_v4  ;;  %v709_v13 = vld [vmem:[#allocation7 + $0x48] sm:$0xff]  ;;  %v714_v15 = vld [vmem:[#allocation7 + $0x40] sm:$0xff]  ;;  %v721_v18 = vld [vmem:[#allocation7 + $0x38] sm:$0xff]  ;;  %s466_s15 = sld [smem:[#allocation2 + $0x82]]  ;;  %s448_s2 = sshll.u32 %s915_s5, 4  ;;  %s449_s2 = int_to_ptr.hbm [resolvable:$true] %s448_s2 }
  0x1b   :  { %234 = vmatpush.msra.mxu1 %v689_v5  ;;  %255 = vmatpush.msra.mxu2 %v689_v5  ;;  %v165_v19 = vld [vmem:[#allocation6 + $0x30] sm:$0xff]  ;;  %v164_v22 = vld [vmem:[#allocation6 + $0x28] sm:$0xff]  ;;  %v163_v24 = vld [vmem:[#allocation6 + $0x20] sm:$0xff]  ;;  %v87_v26 = vstv %s716_s1  ;;  %s468_s16 = sld [smem:[#allocation2 + $0x3]] }
  0x1c   :  { %276 = vmatpush.msra.mxu3 %v689_v5  ;;  %178 = vmatpush.msra.mxu0 %v171_v6  ;;  %v728_v20 = vld [vmem:[#allocation7 + $0x30] sm:$0xff]  ;;  %v735_v23 = vld [vmem:[#allocation7 + $0x28] sm:$0xff]  ;;  %v740_v25 = vld [vmem:[#allocation7 + $0x20] sm:$0xff]  ;;  %v88_v29 = vsel %vm85_vm0, %v87_v26, 4294967295  ;;  %v91_v30 = vstv %s726_s3  ;;  %s469_s17 = sld [smem:[#allocation2 + $0x83]] }
  0x1d   :  { %235 = vmatpush.msra.mxu1 %v694_v7  ;;  %256 = vmatpush.msra.mxu2 %v694_v7  ;;  %v162_v27 = vld [vmem:[#allocation6 + $0x18] sm:$0xff]  ;;  %v161_v31 = vld [vmem:[#allocation6 + $0x10] sm:$0xff]  ;;  %v160_v34 = vld [vmem:[#allocation6 + $0x8] sm:$0xff]  ;;  %v92_v36 = vsel %vm89_vm1, %v91_v30, %v88_v29  ;;  %v97_v41 = vstv %s462_s12  ;;  %s471_s18 = sld [smem:[#allocation2 + $0x4]] }
  0x1e   :  { %277 = vmatpush.msra.mxu3 %v694_v7  ;;  %179 = vmatpush.msra.mxu0 %v170_v8  ;;  %v747_v28 = vld [vmem:[#allocation7 + $0x18] sm:$0xff]  ;;  %v756_v32 = vld [vmem:[#allocation7 + $0x10] sm:$0xff]  ;;  %v763_v35 = vld [vmem:[#allocation7 + $0x8] sm:$0xff]  ;;  %vm93_vm2 = vcmp.eq.s32.totalorder %v761_v33, %v92_v36  ;;  %v100_v42 = vstv %s463_s13  ;;  %v98_v43 = vsel %vm85_vm0, %v97_v41, 4294967295  ;;  %s472_s19 = sld [smem:[#allocation2 + $0x84]] }
  0x1f   :  { %236 = vmatpush.msra.mxu1 %v699_v9  ;;  %257 = vmatpush.msra.mxu2 %v699_v9  ;;  %v159_v37 = vld [vmem:[#allocation6] sm:$0xff]  ;;  %v101_v44 = vsel %vm89_vm1, %v100_v42, %v98_v43  ;;  %v106_v49 = vstv %s465_s14  ;;  %s474_s20 = sld [smem:[#allocation2 + $0x5]]  ;;  %v415_v30 = vld [vmem:[#allocation9 + $0x78] sm:$0xff]  ;;  %v410_v36 = vld [vmem:[#allocation9 + $0x50] sm:$0xff] }
  0x20   :  { %278 = vmatpush.msra.mxu3 %v699_v9  ;;  %180 = vmatpush.msra.mxu0 %v169_v10  ;;  %v770_v38 = vld [vmem:[#allocation7] sm:$0xff]  ;;  %vm102_vm3 = vcmp.eq.s32.totalorder %v761_v33, %v101_v44  ;;  %v109_v50 = vstv %s466_s15  ;;  %v107_v51 = vsel %vm85_vm0, %v106_v49, 4294967295  ;;  %s475_s21 = sld [smem:[#allocation2 + $0x85]]  ;;  %v411_v21 = vld [vmem:[#allocation9 + $0x58] sm:$0xff]  ;;  %v405_v41 = vld [vmem:[#allocation9 + $0x28] sm:$0xff] }
  0x21   :  { %237 = vmatpush.msra.mxu1 %v704_v11  ;;  %258 = vmatpush.msra.mxu2 %v704_v11  ;;  %v110_v52 = vsel %vm89_vm1, %v109_v50, %v107_v51  ;;  %v115_v57 = vstv %s468_s16  ;;  %s477_s22 = sld [smem:[#allocation2 + $0x6]]  ;;  %v400_v49 = vld [vmem:[#allocation9] sm:$0xff] }
  0x22   :  { %279 = vmatpush.msra.mxu3 %v704_v11  ;;  %181 = vmatpush.msra.mxu0 %v168_v12  ;;  %vm111_vm4 = vcmp.eq.s32.totalorder %v761_v33, %v110_v52  ;;  %v118_v58 = vstv %s469_s17  ;;  %v116_v59 = vsel %vm85_vm0, %v115_v57, 4294967295  ;;  %s478_s23 = sld [smem:[#allocation2 + $0x86]] }
  0x23   :  { %238 = vmatpush.msra.mxu1 %v709_v13  ;;  %259 = vmatpush.msra.mxu2 %v709_v13  ;;  %v119_v60 = vsel %vm89_vm1, %v118_v58, %v116_v59  ;;  %s480_s24 = sld [smem:[#allocation2 + $0x7]] }
  0x24   :  { %280 = vmatpush.msra.mxu3 %v709_v13  ;;  %182 = vmatpush.msra.mxu0 %v167_v14  ;;  %vm120_vm5 = vcmp.eq.s32.totalorder %v761_v33, %v119_v60  ;;  %v127_v2 = vstv %s472_s19  ;;  %s481_s25 = sld [smem:[#allocation2 + $0x87]] }
  0x25   :  { %239 = vmatpush.msra.mxu1 %v714_v15  ;;  %260 = vmatpush.msra.mxu2 %v714_v15 }
  0x26   :  { %281 = vmatpush.msra.mxu3 %v714_v15  ;;  %183 = vmatpush.msra.mxu0 %v166_v17  ;;  %v136_v10 = vstv %s475_s21 }
  0x27   :  { %240 = vmatpush.msra.mxu1 %v721_v18  ;;  %261 = vmatpush.msra.mxu2 %v721_v18 }
  0x28   :  { %282 = vmatpush.msra.mxu3 %v721_v18  ;;  %184 = vmatpush.msra.mxu0 %v165_v19 }
  0x29   :  { %241 = vmatpush.msra.mxu1 %v728_v20  ;;  %262 = vmatpush.msra.mxu2 %v728_v20 }
  0x2a   :  { %283 = vmatpush.msra.mxu3 %v728_v20  ;;  %185 = vmatpush.msra.mxu0 %v164_v22  ;;  %v151_v22 = vstv %s480_s24 }
  0x2b   :  { %242 = vmatpush.msra.mxu1 %v735_v23  ;;  %263 = vmatpush.msra.mxu2 %v735_v23 }
  0x2c   :  { %284 = vmatpush.msra.mxu3 %v735_v23  ;;  %186 = vmatpush.msra.mxu0 %v163_v24  ;;  %v154_v24 = vstv %s481_s25 }
  0x2d   :  { %243 = vmatpush.msra.mxu1 %v740_v25  ;;  %264 = vmatpush.msra.mxu2 %v740_v25 }
  0x2e   :  { %285 = vmatpush.msra.mxu3 %v740_v25  ;;  %187 = vmatpush.msra.mxu0 %v162_v27 }
  0x2f   :  { %244 = vmatpush.msra.mxu1 %v747_v28  ;;  %265 = vmatpush.msra.mxu2 %v747_v28 }
  0x30   :  { %286 = vmatpush.msra.mxu3 %v747_v28  ;;  %188 = vmatpush.msra.mxu0 %v161_v31  ;;  %v414_v31 = vld [vmem:[#allocation9 + $0x70] sm:$0xff] }
  0x31   :  { %245 = vmatpush.msra.mxu1 %v756_v32  ;;  %266 = vmatpush.msra.mxu2 %v756_v32 }
  0x32   :  { %287 = vmatpush.msra.mxu3 %v756_v32  ;;  %189 = vmatpush.msra.mxu0 %v160_v34  ;;  %v413_v34 = vld [vmem:[#allocation9 + $0x68] sm:$0xff] }
  0x33   :  { %246 = vmatpush.msra.mxu1 %v763_v35  ;;  %267 = vmatpush.msra.mxu2 %v763_v35 }
  0x34   :  { %288 = vmatpush.msra.mxu3 %v763_v35  ;;  %190 = vmatpush.msra.mxu0 %v159_v37 }
  0x35   :  { %247 = vmatpush.msra.mxu1 %v770_v38  ;;  %483 = vmatmul.msk.f32.vlgmr.msra.gmra.mxu0 %vm93_vm2, %v639_v39 }
  0x36   :  { %248 = vmatmul.f32.vlgmr.msra.gmra.mxu1 %v640_v40  ;;  %268 = vmatpush.msra.mxu2 %v770_v38  ;;  %v406_v40 = vld [vmem:[#allocation9 + $0x30] sm:$0xff] }
  0x37   :  { %289 = vmatpush.msra.mxu3 %v770_v38  ;;  %295 = vmatpush.msrb.mxu1 %v684_v1 }
  0x38   :  { %316 = vmatpush.msrb.mxu2 %v684_v1  ;;  %358 = vmatpush.msrb.mxu0 %v684_v1 }
  0x39   :  { %337 = vmatpush.msrb.mxu3 %v684_v1  ;;  %296 = vmatpush.msrb.mxu1 %v687_v3 }
  0x3a   :  { %317 = vmatpush.msrb.mxu2 %v687_v3  ;;  %359 = vmatpush.msrb.mxu0 %v687_v3 }
  0x3b   :  { %338 = vmatpush.msrb.mxu3 %v687_v3  ;;  %297 = vmatpush.msrb.mxu1 %v689_v5 }
  0x3c   :  { %318 = vmatpush.msrb.mxu2 %v689_v5  ;;  %360 = vmatpush.msrb.mxu0 %v689_v5 }
  0x3d   :  { %339 = vmatpush.msrb.mxu3 %v689_v5  ;;  %298 = vmatpush.msrb.mxu1 %v694_v7 }
  0x3e   :  { %319 = vmatpush.msrb.mxu2 %v694_v7  ;;  %361 = vmatpush.msrb.mxu0 %v694_v7 }
  0x3f   :  { %340 = vmatpush.msrb.mxu3 %v694_v7  ;;  %299 = vmatpush.msrb.mxu1 %v699_v9 }
  0x40   :  { %320 = vmatpush.msrb.mxu2 %v699_v9  ;;  %362 = vmatpush.msrb.mxu0 %v699_v9 }
  0x41   :  { %341 = vmatpush.msrb.mxu3 %v699_v9  ;;  %300 = vmatpush.msrb.mxu1 %v704_v11 }
  0x42   :  { %321 = vmatpush.msrb.mxu2 %v704_v11  ;;  %363 = vmatpush.msrb.mxu0 %v704_v11 }
  0x43   :  { %342 = vmatpush.msrb.mxu3 %v704_v11  ;;  %301 = vmatpush.msrb.mxu1 %v709_v13 }
  0x44   :  { %322 = vmatpush.msrb.mxu2 %v709_v13  ;;  %364 = vmatpush.msrb.mxu0 %v709_v13 }
  0x45   :  { %343 = vmatpush.msrb.mxu3 %v709_v13  ;;  %302 = vmatpush.msrb.mxu1 %v714_v15 }
  0x46   :  { %323 = vmatpush.msrb.mxu2 %v714_v15  ;;  %365 = vmatpush.msrb.mxu0 %v714_v15 }
  0x47   :  { %344 = vmatpush.msrb.mxu3 %v714_v15  ;;  %303 = vmatpush.msrb.mxu1 %v721_v18 }
  0x48   :  { %324 = vmatpush.msrb.mxu2 %v721_v18  ;;  %366 = vmatpush.msrb.mxu0 %v721_v18 }
  0x49   :  { %345 = vmatpush.msrb.mxu3 %v721_v18  ;;  %304 = vmatpush.msrb.mxu1 %v728_v20 }
  0x4a   :  { %325 = vmatpush.msrb.mxu2 %v728_v20  ;;  %367 = vmatpush.msrb.mxu0 %v728_v20 }
  0x4b   :  { %346 = vmatpush.msrb.mxu3 %v728_v20  ;;  %305 = vmatpush.msrb.mxu1 %v735_v23 }
  0x4c   :  { %326 = vmatpush.msrb.mxu2 %v735_v23  ;;  %368 = vmatpush.msrb.mxu0 %v735_v23 }
  0x4d   :  { %347 = vmatpush.msrb.mxu3 %v735_v23  ;;  %306 = vmatpush.msrb.mxu1 %v740_v25 }
  0x4e   :  { %327 = vmatpush.msrb.mxu2 %v740_v25  ;;  %369 = vmatpush.msrb.mxu0 %v740_v25 }
  0x4f   :  { %348 = vmatpush.msrb.mxu3 %v740_v25  ;;  %307 = vmatpush.msrb.mxu1 %v747_v28 }
  0x50   :  { %328 = vmatpush.msrb.mxu2 %v747_v28  ;;  %370 = vmatpush.msrb.mxu0 %v747_v28 }
  0x51   :  { %349 = vmatpush.msrb.mxu3 %v747_v28  ;;  %308 = vmatpush.msrb.mxu1 %v756_v32 }
  0x52   :  { %329 = vmatpush.msrb.mxu2 %v756_v32  ;;  %371 = vmatpush.msrb.mxu0 %v756_v32 }
  0x53   :  { %350 = vmatpush.msrb.mxu3 %v756_v32  ;;  %309 = vmatpush.msrb.mxu1 %v763_v35 }
  0x54   :  { %330 = vmatpush.msrb.mxu2 %v763_v35  ;;  %372 = vmatpush.msrb.mxu0 %v763_v35 }
  0x55   :  { %351 = vmatpush.msrb.mxu3 %v763_v35  ;;  %310 = vmatpush.msrb.mxu1 %v770_v38 }
  0x56   :  { %331 = vmatpush.msrb.mxu2 %v770_v38  ;;  %373 = vmatpush.msrb.mxu0 %v770_v38 }
  0x57   :  { %352 = vmatpush.msrb.mxu3 %v770_v38  ;;  %379 = vmatpush.msra.mxu1 %v684_v1  ;;  %v124_v1 = vstv %s471_s18 }
  0x58   :  { %484 = vmatmul.msk.f32.gmra.mxu0 %vm102_vm3, %v639_v39 }
  0x59   :  { %380 = vmatpush.msra.mxu1 %v687_v3  ;;  %v125_v3 = vsel %vm85_vm0, %v124_v1, 4294967295 }
  0x5a   :  { %v128_v4 = vsel %vm89_vm1, %v127_v2, %v125_v3 }
  0x5b   :  { %381 = vmatpush.msra.mxu1 %v689_v5  ;;  %vm129_vm6 = vcmp.eq.s32.totalorder %v761_v33, %v128_v4 }
  0x5d   :  { %382 = vmatpush.msra.mxu1 %v694_v7 }
  0x5f   :  { %383 = vmatpush.msra.mxu1 %v699_v9  ;;  %v133_v9 = vstv %s474_s20 }
  0x60   :  { %485 = vmatmul.msk.f32.gmra.mxu0 %vm111_vm4, %v639_v39  ;;  %v134_v12 = vsel %vm85_vm0, %v133_v9, 4294967295 }
  0x61   :  { %384 = vmatpush.msra.mxu1 %v704_v11  ;;  %v142_v11 = vstv %s477_s22 }
  0x62   :  { %v143_v14 = vsel %vm85_vm0, %v142_v11, 4294967295 }
  0x63   :  { %385 = vmatpush.msra.mxu1 %v709_v13  ;;  %v137_v13 = vsel %vm89_vm1, %v136_v10, %v134_v12 }
  0x64   :  { %vm138_vm7 = vcmp.eq.s32.totalorder %v761_v33, %v137_v13 }
  0x65   :  { %386 = vmatpush.msra.mxu1 %v714_v15  ;;  %v145_v15 = vstv %s478_s23 }
  0x66   :  { %v146_v16 = vsel %vm89_vm1, %v145_v15, %v143_v14 }
  0x67   :  { %387 = vmatpush.msra.mxu1 %v721_v18  ;;  %vm147_vm8 = vcmp.eq.s32.totalorder %v761_v33, %v146_v16 }
  0x68   :  { %486 = vmatmul.msk.f32.gmra.mxu0 %vm120_vm5, %v639_v39 }
  0x69   :  { %388 = vmatpush.msra.mxu1 %v728_v20 }
  0x6b   :  { %389 = vmatpush.msra.mxu1 %v735_v23  ;;  %v152_v23 = vsel %vm85_vm0, %v151_v22, 4294967295 }
  0x6d   :  { %390 = vmatpush.msra.mxu1 %v740_v25  ;;  %v155_v25 = vsel %vm89_vm1, %v154_v24, %v152_v23 }
  0x6e   :  { %vm156_vm9 = vcmp.eq.s32.totalorder %v761_v33, %v155_v25  ;;  %v409_v33 = vld [vmem:[#allocation9 + $0x48] sm:$0xff] }
  0x6f   :  { %391 = vmatpush.msra.mxu1 %v747_v28 }
  0x70   :  { %487 = vmatmul.msk.f32.gmra.mxu0 %vm129_vm6, %v639_v39 }
  0x71   :  { %392 = vmatpush.msra.mxu1 %v756_v32 }
  0x73   :  { %393 = vmatpush.msra.mxu1 %v763_v35  ;;  %v412_v35 = vld [vmem:[#allocation9 + $0x60] sm:$0xff] }
  0x75   :  { %394 = vmatpush.msra.mxu1 %v770_v38  ;;  %v408_v38 = vld [vmem:[#allocation9 + $0x40] sm:$0xff] }
  0x78   :  { %488 = vmatmul.msk.f32.gmra.mxu0 %vm138_vm7, %v639_v39 }
  0x80   :  { %489 = vmatmul.msk.f32.gmra.mxu0 %vm147_vm8, %v639_v39 }
  0x88   :  { %490 = vmatmul.msk.f32.gmra.mxu0 %vm156_vm9, %v639_v39  ;;  %v407_v39 = vld [vmem:[#allocation9 + $0x38] sm:$0xff] }
  0xb2   :  { %v192_v45 = vpop.f32.mrf.mxu0 }
  0xb3   :  { %v249_v46 = vpop.f32.mrf.mxu1 }
  0xb4   :  { %v250_v47 = vadd.f32 %v249_v46, %v192_v45  ;;  %v404_v45 = vld [vmem:[#allocation9 + $0x20] sm:$0xff]  ;;  %v403_v46 = vld [vmem:[#allocation9 + $0x18] sm:$0xff] }
  0xb6   :  { %501 = vtanh.f32 %v250_v47  ;;  %v402_v47 = vld [vmem:[#allocation9 + $0x10] sm:$0xff] }
  0xbc   :  { %v502_v48 = vpop.eup %501 }
  0xbd   :  { %269 = vmatmul.f32.vlgmr.msra.gmra.mxu2 %v502_v48  ;;  %v401_v48 = vld [vmem:[#allocation9 + $0x8] sm:$0xff] }
  0xbe   :  { %420 = vmatpush.msra.mxu2 %v415_v30 }
  0xc0   :  { %421 = vmatpush.msra.mxu2 %v414_v31 }
  0xc2   :  { %422 = vmatpush.msra.mxu2 %v413_v34 }
  0xc4   :  { %423 = vmatpush.msra.mxu2 %v412_v35 }
  0xc6   :  { %424 = vmatpush.msra.mxu2 %v411_v21 }
  0xc8   :  { %425 = vmatpush.msra.mxu2 %v410_v36 }
  0xca   :  { %426 = vmatpush.msra.mxu2 %v409_v33 }
  0xcc   :  { %427 = vmatpush.msra.mxu2 %v408_v38 }
  0xce   :  { %428 = vmatpush.msra.mxu2 %v407_v39 }
  0xd0   :  { %429 = vmatpush.msra.mxu2 %v406_v40 }
  0xd2   :  { %430 = vmatpush.msra.mxu2 %v405_v41 }
  0xd4   :  { %431 = vmatpush.msra.mxu2 %v404_v45 }
  0xd5   :  { %v195_v53 = vpop.f32.mrf.mxu0 }
  0xd6   :  { %432 = vmatpush.msra.mxu2 %v403_v46 }
  0xd8   :  { %433 = vmatpush.msra.mxu2 %v402_v47 }
  0xda   :  { %434 = vmatpush.msra.mxu2 %v401_v48 }
  0xdc   :  { %435 = vmatpush.msra.mxu2 %v400_v49 }
  0xdd   :  { %v198_v61 = vpop.f32.mrf.mxu0 }
  0xe5   :  { %v201_v5 = vpop.f32.mrf.mxu0 }
  0xed   :  { %v204_v17 = vpop.f32.mrf.mxu0 }
  0xf5   :  { %v207_v26 = vpop.f32.mrf.mxu0 }
  0xfd   :  { %v210_v32 = vpop.f32.mrf.mxu0 }
 0x105   :  { %v213_v37 = vpop.f32.mrf.mxu0 }
 0x140   :  { %v270_v54 = vpop.f32.mrf.mxu2 }
 0x141   :  { %v271_v55 = vadd.f32 %v270_v54, %v195_v53  ;;  %v500_v53 = vld [vmem:[%s914_s4] ss:$0 sm:$0xff] }
 0x143   :  { %503 = vtanh.f32 %v271_v55 }
 0x149   :  { %v504_v56 = vpop.eup %503 }
 0x14a   :  { %290 = vmatmul.f32.vlgmr.msra.gmra.mxu3 %v504_v56 }
 0x1cd   :  { %v291_v62 = vpop.f32.mrf.mxu3 }
 0x1ce   :  { %v292_v63 = vadd.f32 %v291_v62, %v198_v61 }
 0x1d0   :  { %505 = vtanh.f32 %v292_v63 }
 0x1d6   :  { %v506_v0 = vpop.eup %505 }
 0x1d7   :  { %311 = vmatmul.f32.vlgmr.msrb.gmra.mxu1 %v506_v0 }
 0x254   :  { %v312_v6 = vpop.f32.mrf.mxu1 }
 0x255   :  { %v313_v7 = vadd.f32 %v312_v6, %v201_v5 }
 0x257   :  { %507 = vtanh.f32 %v313_v7 }
 0x25d   :  { %v508_v8 = vpop.eup %507 }
 0x25e   :  { %332 = vmatmul.f32.vlgmr.msrb.gmra.mxu2 %v508_v8 }
 0x2e1   :  { %v333_v18 = vpop.f32.mrf.mxu2 }
 0x2e2   :  { %v334_v19 = vadd.f32 %v333_v18, %v204_v17 }
 0x2e4   :  { %509 = vtanh.f32 %v334_v19 }
 0x2ea   :  { %v510_v20 = vpop.eup %509 }
 0x2eb   :  { %353 = vmatmul.f32.vlgmr.msrb.gmra.mxu3 %v510_v20 }
 0x36e   :  { %v354_v27 = vpop.f32.mrf.mxu3 }
 0x36f   :  { %v355_v28 = vadd.f32 %v354_v27, %v207_v26 }
 0x371   :  { %511 = vtanh.f32 %v355_v28 }
 0x377   :  { %v512_v29 = vpop.eup %511 }
 0x378   :  { %374 = vmatmul.f32.vlgmr.msrb.gmra.mxu0 %v512_v29 }
 0x3f5   :  { %v375_v42 = vpop.f32.mrf.mxu0 }
 0x3f6   :  { %v376_v43 = vadd.f32 %v375_v42, %v210_v32 }
 0x3f8   :  { %513 = vtanh.f32 %v376_v43 }
 0x3fe   :  { %v514_v44 = vpop.eup %513 }
 0x3ff   :  { %395 = vmatmul.f32.vlgmr.msra.gmra.mxu1 %v514_v44 }
 0x47c   :  { %v396_v50 = vpop.f32.mrf.mxu1 }
 0x47d   :  { %v397_v51 = vadd.f32 %v396_v50, %v213_v37 }
 0x47f   :  { %515 = vtanh.f32 %v397_v51 }
 0x485   :  { %v516_v52 = vpop.eup %515 }
 0x486   :  { %436 = vmatmul.f32.vlgmr.msra.gmra.mxu2 %v516_v52 }
 0x509   :  { %v437_v54 = vpop.f32.mrf.mxu2 }
 0x50a   :  { %v438_v55 = vadd.f32 %v500_v53, %v437_v54 }
 0x50c   :  { %440 = vst [vmem:[#allocation10] sm:$0xff] %v438_v55 }
 0x50d   :  { %451 = dma.vmem_to_hbm [thread:$0]  %s447_s29, 128, %s449_s2, [#allocation4]  }
 0x50e   :  { %631 = dma.done.wait [#allocation4], 128  }
 0x50f   :  { %632 = vsyncadd [#allocation4], 4294967168 }
 0x510   :  { %456 = vsyncpa [#allocation3], 1 }
 0x511   :  { %457 = vsyncpa [#allocation8], 1 }
 0x512   :  { %458 = vsyncpa [#allocation4], 1 }
 0x513   :  { %459 = vsyncpa [#allocation5], 1 }

</bundles_post_ra>
